<compile_context>
chip_gen: v5e
topology: v5e:2x2
jax: 0.10.0
libtpu: 0.0.40
codegen_flags: <defaults>
</compile_context>

<pallas_src>
import functools

import jax
import jax.numpy as jnp
import numpy as np
from jax.experimental import pallas as pl
from jax.experimental.pallas import tpu as pltpu


def _cls_corr_kernel(z_ref, y_ref, out_ref,
                     acc_z_ref, acc_z2_ref, acc_1_ref, acc_n1_ref,
                     *, n_true):
    t = pl.program_id(0)

    @pl.when(t == 0)
    def _init():
        acc_z_ref[...] = jnp.zeros_like(acc_z_ref)
        acc_z2_ref[...] = jnp.zeros_like(acc_z2_ref)
        acc_1_ref[...] = jnp.zeros_like(acc_1_ref)
        acc_n1_ref[...] = jnp.zeros_like(acc_n1_ref)

    # Native-dtype DMA; cast per tile, accumulate in f32.
    z = z_ref[...].astype(jnp.float32)          # (TILE_N, D); pad rows are 0
    y = y_ref[...].astype(jnp.float32)          # (TILE_N, 1); pad rows are 0
    tn, d = z.shape
    g = tn // 8

    # Class-1 mask: zero-padded rows automatically fail y == 1, so no extra
    # row-validity masking is needed.
    m1 = (y == 1.0).astype(jnp.float32)         # (TILE_N, 1)

    # Layout-preserving reshapes: collapse groups of 8 sublane-rows with pure
    # vreg-wise VPU adds; the cross-sublane reduction is deferred to finalize.
    acc_z_ref[...] += jnp.sum(z.reshape(g, 8, d), axis=0)
    acc_z2_ref[...] += jnp.sum((z * z).reshape(g, 8, d), axis=0)
    acc_1_ref[...] += jnp.sum((z * m1).reshape(g, 8, d), axis=0)
    acc_n1_ref[...] += jnp.sum(m1.reshape(g, 8, 1), axis=0)

    @pl.when(t == pl.num_programs(0) - 1)
    def _finalize():
        nf = float(n_true)
        sum_z = jnp.sum(acc_z_ref[...], axis=0, keepdims=True)     # (1, D)
        sum_z2 = jnp.sum(acc_z2_ref[...], axis=0, keepdims=True)   # (1, D)
        sum1 = jnp.sum(acc_1_ref[...], axis=0, keepdims=True)      # (1, D)
        n1 = jnp.sum(acc_n1_ref[...])
        n0 = nf - n1                        # binary labels: n0 = N - n1
        sum0 = sum_z - sum1                 # sum over class-0 rows

        mean1 = sum1 / n1
        mean0 = sum0 / n0
        # unbiased (ddof=1) per-column variance over ALL rows, single pass
        var = (sum_z2 - sum_z * sum_z / nf) / (nf - 1.0)
        mlt = jnp.sqrt(n1 * n0 / (nf * nf))
        abs_corr = jnp.abs((mean1 - mean0) * jax.lax.rsqrt(var) * mlt)  # (1, D)

        total = jnp.sum(abs_corr)
        col0 = jax.lax.broadcasted_iota(jnp.int32, abs_corr.shape, 1) == 0
        r_pb_abs = jnp.sum(jnp.where(col0, abs_corr, 0.0))
        other_sum = total - r_pb_abs

        # torch quirk kept: divisor is N (length of zeros_like(z[:, 1])), not D-1
        out_ref[0, 0] = (1.0 - r_pb_abs) + other_sum / nf


def _round_up(x, m):
    return (x + m - 1) // m * m


def _auto_tile(n, d, z_itemsize, y_itemsize):
    d_lanes = _round_up(d, 128)
    # Target ~1 MiB of real z data streamed per grid step (per-step overhead
    # is ~0.35 us, small D otherwise sits far below the HBM roofline).
    rows = (1 << 20) // max(1, d * z_itemsize)
    rows = max(512, min(rows, 8192))
    # Keep the double-buffered, lane-padded (z + y) VMEM footprint under
    # ~16 MiB so the 2-deep pipeline survives v7x's smaller VMEM and v5e's
    # 16 MiB scoped-VMEM default.
    bytes_per_row_vmem = d_lanes * z_itemsize + 128 * y_itemsize
    rows = min(rows, (16 << 20) // (2 * bytes_per_row_vmem))
    rows = max(8, min(rows, _round_up(n, 8)))
    return _round_up(rows, 8)


def cls_correlation_loss(z_batch, y_batch, *, tile_n=None):
    """z_batch: (N, D); y_batch: (N,) or (N, 1) with binary 0/1 class labels."""
    z = jnp.asarray(z_batch)
    n, d = z.shape
    y = jnp.asarray(y_batch).reshape(n, 1)

    z_item = jnp.dtype(z.dtype).itemsize
    y_item = jnp.dtype(y.dtype).itemsize
    if tile_n is None:
        tile = _auto_tile(n, d, z_item, y_item)
    else:
        tile = _round_up(max(8, min(int(tile_n), _round_up(n, 8))), 8)

    n_pad = _round_up(n, tile)
    if n_pad != n:
        # Zero padding only: pad rows contribute nothing to sum_z / sum_z2 and
        # fail the y == 1 class mask, so the kernel needs no validity masking.
        z = jnp.pad(z, ((0, n_pad - n), (0, 0)))
        y = jnp.pad(y, ((0, n_pad - n), (0, 0)))
    num_tiles = n_pad // tile

    d_lanes = _round_up(d, 128)
    scratch_bytes = (3 * 8 * d_lanes + 8 * 128) * 4
    vmem_limit = 2 * tile * (d_lanes * z_item + 128 * y_item) + scratch_bytes
    vmem_limit = int(min(max(vmem_limit + (4 << 20), 16 << 20), 32 << 20))

    kernel = functools.partial(_cls_corr_kernel, n_true=n)
    # TODO(synk): on v7x, split the N-stream across the two TensorCores with a
    # leading "parallel" grid axis and reduce per-core partial sums in plain JAX.
    # TODO(synk): if D << 128 in production, lane-pack (N, D) -> (N/k, k*D) in
    # the wrapper to recover lane utilization; skipped here (test D is tiny).
    out = pl.pallas_call(
        kernel,
        out_shape=jax.ShapeDtypeStruct((1, 1), jnp.float32),
        grid_spec=pltpu.PrefetchScalarGridSpec(
            num_scalar_prefetch=0,
            grid=(num_tiles,),
            in_specs=[
                pl.BlockSpec((tile, d), lambda i: (i, 0)),
                pl.BlockSpec((tile, 1), lambda i: (i, 0)),
            ],
            out_specs=pl.BlockSpec(memory_space=pltpu.SMEM),
            scratch_shapes=[
                pltpu.VMEM((8, d), jnp.float32),   # partial sum_z
                pltpu.VMEM((8, d), jnp.float32),   # partial sum_z^2
                pltpu.VMEM((8, d), jnp.float32),   # partial sum over class-1 rows
                pltpu.VMEM((8, 1), jnp.float32),   # partial n1 count
            ],
        ),
        compiler_params=pltpu.CompilerParams(
            dimension_semantics=("arbitrary",),
            vmem_limit_bytes=vmem_limit),
    )(z, y)
    return out[0, 0]


def _reference(z, y):
    # pure-JAX reference mirroring the torch code (for a silent sanity check)
    z = jnp.asarray(z, jnp.float32)
    y = jnp.asarray(y).reshape(-1).astype(jnp.float32)
    m1 = (y == 1.0).astype(jnp.float32)
    m0 = (y == 0.0).astype(jnp.float32)
    n1 = jnp.sum(m1)
    n0 = jnp.sum(m0)
    n = n1 + n0
    mean1 = jnp.sum(z * m1[:, None], axis=0) / n1
    mean0 = jnp.sum(z * m0[:, None], axis=0) / n0
    std = jnp.std(z, axis=0, ddof=1)
    mlt = jnp.sqrt(n1 * n0 / (n * n))
    corr = (mean1 - mean0) / std * mlt
    big_n = z.shape[0]
    return (1.0 - jnp.abs(corr[0])) + jnp.sum(jnp.abs(corr[1:])) / big_n


if __name__ == "__main__":
    key = jax.random.PRNGKey(0)
    k1, k2 = jax.random.split(key)

    # Case 1: multi-tile streamed path with a ragged batch (N not a multiple of tile_n).
    N, D = 200, 16
    z_batch = jax.random.normal(k1, (N, D), dtype=jnp.float32)
    y_batch = (jnp.arange(N) % 2).astype(jnp.float32)   # both classes present
    loss = cls_correlation_loss(z_batch, y_batch, tile_n=64)
    jax.block_until_ready(loss)
    ref = _reference(z_batch, y_batch)
    assert np.isclose(float(loss), float(ref), rtol=1e-4, atol=1e-5), (float(loss), float(ref))

    # Case 2: tiny single-tile path with auto tile sizing (original toy usage).
    N2, D2 = 8, 4
    z2 = jax.random.normal(k2, (N2, D2), dtype=jnp.float32)
    y2 = jnp.array([1.0, 0.0, 1.0, 1.0, 0.0, 0.0, 1.0, 0.0], dtype=jnp.float32)
    loss2 = cls_correlation_loss(z2, y2)
    jax.block_until_ready(loss2)
    ref2 = _reference(z2, y2)
    assert np.isclose(float(loss2), float(ref2), rtol=1e-4, atol=1e-5), (float(loss2), float(ref2))

    # Case 3: bf16 latents (halved HBM traffic; in-kernel accumulation stays f32).
    z_bf16 = z_batch.astype(jnp.bfloat16)
    loss3 = cls_correlation_loss(z_bf16, y_batch, tile_n=64)
    jax.block_until_ready(loss3)
    ref3 = _reference(z_bf16.astype(jnp.float32), y_batch)
    assert np.isclose(float(loss3), float(ref3), rtol=1e-3, atol=1e-4), (float(loss3), float(ref3))

    print("KERNEL_OK")
</pallas_src>

<mosaic_0001>
module attributes {stable_mosaic.version = 11 : i64} {
  func.func @_cls_corr_kernel(%arg0: i32, %arg1: memref<64x16xf32, #tpu.memory_space<vmem>>, %arg2: memref<64x1xf32, #tpu.memory_space<vmem>>, %arg3: memref<1x1xf32, #tpu.memory_space<smem>>, %arg4: memref<8x16xf32, #tpu.memory_space<vmem>>, %arg5: memref<8x16xf32, #tpu.memory_space<vmem>>, %arg6: memref<8x16xf32, #tpu.memory_space<vmem>>, %arg7: memref<8x1xf32, #tpu.memory_space<vmem>>) attributes {dimension_semantics = [#tpu.dimension_semantics<arbitrary>], iteration_bounds = array<i64: 4>, scalar_prefetch = 0 : i64, scratch_operands = 4 : i64, tpu.core_type = #tpu.core_type<tc>, window_params = [{transform_indices = @transform_0, window_bounds = array<i64: 64, 16>}, {transform_indices = @transform_1, window_bounds = array<i64: 64, 1>}, {transform_indices = @transform_2, window_bounds = array<i64: 1, 1>}]} {
    %c0_i32 = arith.constant 0 : i32
    %0 = arith.cmpi eq, %arg0, %c0_i32 : i32
    %1 = arith.extui %0 : i1 to i32
    %c0_i32_0 = arith.constant 0 : i32
    %2 = arith.cmpi ne, %1, %c0_i32_0 : i32
    scf.if %2 {
      %cst_25 = arith.constant 0.000000e+00 : f32
      %35 = vector.broadcast %cst_25 : f32 to vector<8x16xf32>
      %c0_26 = arith.constant 0 : index
      %c0_27 = arith.constant 0 : index
      %36 = vector.load %arg4[%c0_26, %c0_27] : memref<8x16xf32, #tpu.memory_space<vmem>>, vector<8x16xf32>
      tpu.vector_store %arg4[%c0_26, %c0_27], %35 {strides = array<i32>} : memref<8x16xf32, #tpu.memory_space<vmem>>, vector<8x16xf32>,
      %cst_28 = arith.constant 0.000000e+00 : f32
      %37 = vector.broadcast %cst_28 : f32 to vector<8x16xf32>
      %c0_29 = arith.constant 0 : index
      %c0_30 = arith.constant 0 : index
      %38 = vector.load %arg5[%c0_29, %c0_30] : memref<8x16xf32, #tpu.memory_space<vmem>>, vector<8x16xf32>
      tpu.vector_store %arg5[%c0_29, %c0_30], %37 {strides = array<i32>} : memref<8x16xf32, #tpu.memory_space<vmem>>, vector<8x16xf32>,
      %cst_31 = arith.constant 0.000000e+00 : f32
      %39 = vector.broadcast %cst_31 : f32 to vector<8x16xf32>
      %c0_32 = arith.constant 0 : index
      %c0_33 = arith.constant 0 : index
      %40 = vector.load %arg6[%c0_32, %c0_33] : memref<8x16xf32, #tpu.memory_space<vmem>>, vector<8x16xf32>
      tpu.vector_store %arg6[%c0_32, %c0_33], %39 {strides = array<i32>} : memref<8x16xf32, #tpu.memory_space<vmem>>, vector<8x16xf32>,
      %cst_34 = arith.constant 0.000000e+00 : f32
      %41 = vector.broadcast %cst_34 : f32 to vector<8x1xf32>
      %c0_35 = arith.constant 0 : index
      %c0_36 = arith.constant 0 : index
      %42 = vector.load %arg7[%c0_35, %c0_36] : memref<8x1xf32, #tpu.memory_space<vmem>>, vector<8x1xf32>
      tpu.vector_store %arg7[%c0_35, %c0_36], %41 {strides = array<i32>} : memref<8x1xf32, #tpu.memory_space<vmem>>, vector<8x1xf32>,
    } else {
    }
    %c0 = arith.constant 0 : index
    %c0_1 = arith.constant 0 : index
    %3 = vector.load %arg1[%c0, %c0_1] : memref<64x16xf32, #tpu.memory_space<vmem>>, vector<64x16xf32>
    %c0_2 = arith.constant 0 : index
    %c0_3 = arith.constant 0 : index
    %4 = vector.load %arg2[%c0_2, %c0_3] : memref<64x1xf32, #tpu.memory_space<vmem>>, vector<64x1xf32>
    %cst = arith.constant 1.000000e+00 : f32
    %5 = vector.broadcast %cst : f32 to vector<64x1xf32>
    %6 = arith.cmpf oeq, %4, %5 : vector<64x1xf32>
    %7 = arith.extui %6 : vector<64x1xi1> to vector<64x1xi32>
    %8 = arith.sitofp %7 : vector<64x1xi32> to vector<64x1xf32>
    %c0_4 = arith.constant 0 : index
    %c0_5 = arith.constant 0 : index
    %9 = vector.load %arg4[%c0_4, %c0_5] : memref<8x16xf32, #tpu.memory_space<vmem>>, vector<8x16xf32>
    %10 = vector.shape_cast %3 : vector<64x16xf32> to vector<8x8x16xf32>
    %cst_6 = arith.constant dense<0.000000e+00> : vector<8x16xf32>
    %11 = vector.multi_reduction <add>, %10, %cst_6 [0] : vector<8x8x16xf32> to vector<8x16xf32>
    %12 = arith.addf %9, %11 : vector<8x16xf32>
    %c0_7 = arith.constant 0 : index
    %c0_8 = arith.constant 0 : index
    %13 = vector.load %arg4[%c0_7, %c0_8] : memref<8x16xf32, #tpu.memory_space<vmem>>, vector<8x16xf32>
    tpu.vector_store %arg4[%c0_7, %c0_8], %12 {strides = array<i32>} : memref<8x16xf32, #tpu.memory_space<vmem>>, vector<8x16xf32>,
    %c0_9 = arith.constant 0 : index
    %c0_10 = arith.constant 0 : index
    %14 = vector.load %arg5[%c0_9, %c0_10] : memref<8x16xf32, #tpu.memory_space<vmem>>, vector<8x16xf32>
    %15 = arith.mulf %3, %3 : vector<64x16xf32>
    %16 = vector.shape_cast %15 : vector<64x16xf32> to vector<8x8x16xf32>
    %cst_11 = arith.constant dense<0.000000e+00> : vector<8x16xf32>
    %17 = vector.multi_reduction <add>, %16, %cst_11 [0] : vector<8x8x16xf32> to vector<8x16xf32>
    %18 = arith.addf %14, %17 : vector<8x16xf32>
    %c0_12 = arith.constant 0 : index
    %c0_13 = arith.constant 0 : index
    %19 = vector.load %arg5[%c0_12, %c0_13] : memref<8x16xf32, #tpu.memory_space<vmem>>, vector<8x16xf32>
    tpu.vector_store %arg5[%c0_12, %c0_13], %18 {strides = array<i32>} : memref<8x16xf32, #tpu.memory_space<vmem>>, vector<8x16xf32>,
    %c0_14 = arith.constant 0 : index
    %c0_15 = arith.constant 0 : index
    %20 = vector.load %arg6[%c0_14, %c0_15] : memref<8x16xf32, #tpu.memory_space<vmem>>, vector<8x16xf32>
    %21 = vector.broadcast %8 : vector<64x1xf32> to vector<64x16xf32>
    %22 = arith.mulf %3, %21 : vector<64x16xf32>
    %23 = vector.shape_cast %22 : vector<64x16xf32> to vector<8x8x16xf32>
    %cst_16 = arith.constant dense<0.000000e+00> : vector<8x16xf32>
    %24 = vector.multi_reduction <add>, %23, %cst_16 [0] : vector<8x8x16xf32> to vector<8x16xf32>
    %25 = arith.addf %20, %24 : vector<8x16xf32>
    %c0_17 = arith.constant 0 : index
    %c0_18 = arith.constant 0 : index
    %26 = vector.load %arg6[%c0_17, %c0_18] : memref<8x16xf32, #tpu.memory_space<vmem>>, vector<8x16xf32>
    tpu.vector_store %arg6[%c0_17, %c0_18], %25 {strides = array<i32>} : memref<8x16xf32, #tpu.memory_space<vmem>>, vector<8x16xf32>,
    %c0_19 = arith.constant 0 : index
    %c0_20 = arith.constant 0 : index
    %27 = vector.load %arg7[%c0_19, %c0_20] : memref<8x1xf32, #tpu.memory_space<vmem>>, vector<8x1xf32>
    %28 = vector.shape_cast %8 : vector<64x1xf32> to vector<8x8x1xf32>
    %cst_21 = arith.constant dense<0.000000e+00> : vector<8x1xf32>
    %29 = vector.multi_reduction <add>, %28, %cst_21 [0] : vector<8x8x1xf32> to vector<8x1xf32>
    %30 = arith.addf %27, %29 : vector<8x1xf32>
    %c0_22 = arith.constant 0 : index
    %c0_23 = arith.constant 0 : index
    %31 = vector.load %arg7[%c0_22, %c0_23] : memref<8x1xf32, #tpu.memory_space<vmem>>, vector<8x1xf32>
    tpu.vector_store %arg7[%c0_22, %c0_23], %30 {strides = array<i32>} : memref<8x1xf32, #tpu.memory_space<vmem>>, vector<8x1xf32>,
    %c3_i32 = arith.constant 3 : i32
    %32 = arith.cmpi eq, %arg0, %c3_i32 : i32
    %33 = arith.extui %32 : i1 to i32
    %c0_i32_24 = arith.constant 0 : i32
    %34 = arith.cmpi ne, %33, %c0_i32_24 : i32
    scf.if %34 {
      %c0_25 = arith.constant 0 : index
      %c0_26 = arith.constant 0 : index
      %35 = vector.load %arg4[%c0_25, %c0_26] : memref<8x16xf32, #tpu.memory_space<vmem>>, vector<8x16xf32>
      %cst_27 = arith.constant dense<0.000000e+00> : vector<16xf32>
      %36 = vector.multi_reduction <add>, %35, %cst_27 [0] : vector<8x16xf32> to vector<16xf32>
      %37 = vector.shape_cast %36 : vector<16xf32> to vector<1x16xf32>
      %c0_28 = arith.constant 0 : index
      %c0_29 = arith.constant 0 : index
      %38 = vector.load %arg5[%c0_28, %c0_29] : memref<8x16xf32, #tpu.memory_space<vmem>>, vector<8x16xf32>
      %cst_30 = arith.constant dense<0.000000e+00> : vector<16xf32>
      %39 = vector.multi_reduction <add>, %38, %cst_30 [0] : vector<8x16xf32> to vector<16xf32>
      %40 = vector.shape_cast %39 : vector<16xf32> to vector<1x16xf32>
      %c0_31 = arith.constant 0 : index
      %c0_32 = arith.constant 0 : index
      %41 = vector.load %arg6[%c0_31, %c0_32] : memref<8x16xf32, #tpu.memory_space<vmem>>, vector<8x16xf32>
      %cst_33 = arith.constant dense<0.000000e+00> : vector<16xf32>
      %42 = vector.multi_reduction <add>, %41, %cst_33 [0] : vector<8x16xf32> to vector<16xf32>
      %43 = vector.shape_cast %42 : vector<16xf32> to vector<1x16xf32>
      %c0_34 = arith.constant 0 : index
      %c0_35 = arith.constant 0 : index
      %44 = vector.load %arg7[%c0_34, %c0_35] : memref<8x1xf32, #tpu.memory_space<vmem>>, vector<8x1xf32>
      %45 = vector.shape_cast %44 : vector<8x1xf32> to vector<1x8x1xf32>
      %cst_36 = arith.constant dense<0.000000e+00> : vector<1xf32>
      %46 = vector.multi_reduction <add>, %45, %cst_36 [1, 2] : vector<1x8x1xf32> to vector<1xf32>
      %47 = vector.shape_cast %46 : vector<1xf32> to vector<1x1x1xf32>
      %48 = vector.extract %47[0, 0, 0] : f32 from vector<1x1x1xf32>
      %cst_37 = arith.constant 2.000000e+02 : f32
      %49 = arith.subf %cst_37, %48 : f32
      %50 = arith.subf %37, %43 : vector<1x16xf32>
      %51 = vector.broadcast %48 : f32 to vector<1x16xf32>
      %52 = arith.divf %43, %51 : vector<1x16xf32>
      %53 = vector.broadcast %49 : f32 to vector<1x16xf32>
      %54 = arith.divf %50, %53 : vector<1x16xf32>
      %55 = arith.mulf %37, %37 : vector<1x16xf32>
      %cst_38 = arith.constant 2.000000e+02 : f32
      %56 = vector.broadcast %cst_38 : f32 to vector<1x16xf32>
      %57 = arith.divf %55, %56 : vector<1x16xf32>
      %58 = arith.subf %40, %57 : vector<1x16xf32>
      %cst_39 = arith.constant 1.990000e+02 : f32
      %59 = vector.broadcast %cst_39 : f32 to vector<1x16xf32>
      %60 = arith.divf %58, %59 : vector<1x16xf32>
      %61 = arith.mulf %48, %49 : f32
      %cst_40 = arith.constant 4.000000e+04 : f32
      %62 = arith.divf %61, %cst_40 : f32
      %63 = math.sqrt %62 : f32
      %64 = arith.subf %52, %54 : vector<1x16xf32>
      %65 = math.rsqrt %60 : vector<1x16xf32>
      %66 = arith.mulf %64, %65 : vector<1x16xf32>
      %67 = vector.broadcast %63 : f32 to vector<1x16xf32>
      %68 = arith.mulf %66, %67 : vector<1x16xf32>
      %69 = math.absf %68 : vector<1x16xf32>
      %70 = vector.shape_cast %69 : vector<1x16xf32> to vector<1x1x16xf32>
      %cst_41 = arith.constant dense<0.000000e+00> : vector<1xf32>
      %71 = vector.multi_reduction <add>, %70, %cst_41 [1, 2] : vector<1x1x16xf32> to vector<1xf32>
      %72 = vector.shape_cast %71 : vector<1xf32> to vector<1x1x1xf32>
      %73 = vector.extract %72[0, 0, 0] : f32 from vector<1x1x1xf32>
      %74 = tpu.iota {dimensions = array<i32: 1>} : vector<1x16xi32>
      %c0_i32_42 = arith.constant 0 : i32
      %75 = vector.broadcast %c0_i32_42 : i32 to vector<1x16xi32>
      %76 = arith.cmpi eq, %74, %75 : vector<1x16xi32>
      %cst_43 = arith.constant 0.000000e+00 : f32
      %77 = vector.broadcast %cst_43 : f32 to vector<1x16xf32>
      %78 = arith.select %76, %69, %77 : vector<1x16xi1>, vector<1x16xf32>
      %79 = vector.shape_cast %78 : vector<1x16xf32> to vector<1x1x16xf32>
      %cst_44 = arith.constant dense<0.000000e+00> : vector<1xf32>
      %80 = vector.multi_reduction <add>, %79, %cst_44 [1, 2] : vector<1x1x16xf32> to vector<1xf32>
      %81 = vector.shape_cast %80 : vector<1xf32> to vector<1x1x1xf32>
      %82 = vector.extract %81[0, 0, 0] : f32 from vector<1x1x1xf32>
      %83 = arith.subf %73, %82 : f32
      %cst_45 = arith.constant 1.000000e+00 : f32
      %84 = arith.subf %cst_45, %82 : f32
      %cst_46 = arith.constant 2.000000e+02 : f32
      %85 = arith.divf %83, %cst_46 : f32
      %86 = arith.addf %84, %85 : f32
      %c0_47 = arith.constant 0 : index
      %c0_48 = arith.constant 0 : index
      %87 = memref.load %arg3[%c0_47, %c0_48] : memref<1x1xf32, #tpu.memory_space<smem>>
      memref.store %86, %arg3[%c0_47, %c0_48] : memref<1x1xf32, #tpu.memory_space<smem>>
    } else {
    }
    return
  }
  func.func @transform_0(%arg0: i32) -> (i32, i32) {
    %c0_i32 = arith.constant 0 : i32
    %c0_i32_0 = arith.constant 0 : i32
    return %arg0, %c0_i32 : i32, i32
  }
  func.func @transform_1(%arg0: i32) -> (i32, i32) {
    %c0_i32 = arith.constant 0 : i32
    %c0_i32_0 = arith.constant 0 : i32
    return %arg0, %c0_i32 : i32, i32
  }
  func.func @transform_2(%arg0: i32) -> (i32, i32) {
    %c0_i32 = arith.constant 0 : i32
    %c0_i32_0 = arith.constant 0 : i32
    %c0_i32_1 = arith.constant 0 : i32
    return %c0_i32, %c0_i32_0 : i32, i32
  }
}

</mosaic_0001>

<bundles_post_ra>
// kernel: tpu_custom_call.1
= control target key start
LH: loop header
LB: loop body
LE: loop exit
PB: predicated region body
PF: predicated region fallthrough
CT: control target
= control target key end

     0   :  { %7 = vsyncpa [#allocation7], 0  ;;  %s701_s9 = smov 0   ;;  %s805_s0 = inlined_call_operand.vmem [shape: f32[256,16], index: 0, kind: input, shape index: {}]   ;;  %s806_s1 = inlined_call_operand.vmem [shape: f32[256,1], index: 1, kind: input, shape index: {}]   ;;  %s807_s2 = inlined_call_operand.hbm [shape: f32[1,1], index: 2, kind: output, shape index: {}]  }
   0x1 LB: > { %s707_s10 = sadd.s32 4294967295, %s677_s9   ;;  %p565_p0 = scmp.ge.s32.totalorder %s677_s9, 1  ;;  %s677_s9 = sphi %s701_s9, %s13_s9  }
   0x2   : > { %p120_p1 = scmp.lt.s32.totalorder %s677_s9, 5 }
   0x4   : > { %p121_p2 = pnand %p565_p0, %p120_p1 }
   0x5   : > { %s566_s11 = sshll.u32 (!%p121_p2), %s707_s10, 3  ;;  %p570_p4 = scmp.ne.s32.totalorder (!%p121_p2), %s707_s10, 0 }
   0x6   : > { %124 = sbr.rel (%p121_p2) target bundleno = 626 (0x272), region = 28  ;;  %p143_p3 = scmp.lt.s32.totalorder (!%p121_p2), %s566_s11, 31 }
   0xb   : > { %s809_s11 = smov (!%p143_p3, %s566_s11), 31  ;;  %157 = sbr.rel (%p570_p4) target bundleno = 21 (0x15), region = 32 }
   0xc   : > { %s567_s12 = sshll.u32 %s809_s11, 3 }
   0xd   : > { %s715_s15 = scalar_lea.vmem %s805_s0, %s567_s12  ;;  %s720_s18 = scalar_lea.vmem %s806_s1, %s567_s12 }
  0x10   : > { %vm158_vm0 = vcmask 130048   ;;  %v679_v0 = vmov 0.0   ;;  %vm162_vm1 = vcmask 7168  }
  0x11   : > { %159 = vst.msk [vmem:[#allocation2] sm:$0xff] %vm158_vm0, %v679_v0 }
  0x12   : > { %160 = vst.msk [vmem:[#allocation3] sm:$0xff] %vm158_vm0, %v679_v0 }
  0x13   : > { %161 = vst.msk [vmem:[#allocation4] sm:$0xff] %vm158_vm0, %v679_v0 }
  0x14   : > { %163 = vst.msk [vmem:[#allocation5] sm:$0xff] %vm162_vm1, %v679_v0 }
  0x15 PF: > { %v176_v1 = vld [vmem:[%s720_s18 + $0x20] sm:$0xff]  ;;  %v177_v2 = vld [vmem:[%s720_s18 + $0x28] sm:$0xff]  ;;  %vm316_vm2 = vcmask 7168   ;;  %v680_v4 = vmov 0   ;;  %v174_v6 = vld [vmem:[%s720_s18 + $0x10] sm:$0xff]  ;;  %v681_v8 = vmov 0.0  }
  0x16   : > { %v172_v3 = vld [vmem:[%s720_s18] sm:$0xff]  ;;  %628 = vset.pattern.permute.xlu1 %v680_v4  ;;  %617 = vset.pattern.permute.xlu0 %v680_v4  ;;  %vm184_vm3 = vcmp.eq.f32.partialorder %v176_v1, 1.0  ;;  %vm185_vm4 = vcmp.eq.f32.partialorder %v177_v2, 1.0  ;;  %v173_v5 = vld [vmem:[%s720_s18 + $0x8] sm:$0xff]  ;;  %v175_v7 = vld [vmem:[%s720_s18 + $0x18] sm:$0xff]  ;;  %vm182_vm7 = vcmp.eq.f32.partialorder %v174_v6, 1.0 }
  0x17   : > { %vm180_vm5 = vcmp.eq.f32.partialorder %v172_v3, 1.0  ;;  %v575_v9 = vsel %vm184_vm3, 1.0, %v681_v8  ;;  %v576_v10 = vsel %vm185_vm4, 1.0, %v681_v8  ;;  %vm181_vm6 = vcmp.eq.f32.partialorder %v173_v5, 1.0  ;;  %v178_v12 = vld [vmem:[%s720_s18 + $0x30] sm:$0xff]  ;;  %v179_v13 = vld [vmem:[%s720_s18 + $0x38] sm:$0xff] }
  0x18   : > { %v629_v11 = vpack.i.bf16 %v576_v10, %v575_v9  ;;  %vm183_vm8 = vcmp.eq.f32.partialorder %v175_v7, 1.0  ;;  %v571_v14 = vsel %vm180_vm5, 1.0, %v681_v8  ;;  %v572_v15 = vsel %vm181_vm6, 1.0, %v681_v8  ;;  %v164_v40 = vld [vmem:[%s715_s15] sm:$0xff]  ;;  %v165_v41 = vld [vmem:[%s715_s15 + $0x8] sm:$0xff]  ;;  %v166_v52 = vld [vmem:[%s715_s15 + $0x10] sm:$0xff] }
  0x19   : > { %v573_v16 = vsel %vm182_vm7, 1.0, %v681_v8  ;;  %v318_v17 = vsel %vm316_vm2, %v572_v15, 0.0  ;;  %v618_v18 = vpack.i.bf16 %v572_v15, %v571_v14  ;;  %v317_v20 = vsel %vm316_vm2, %v571_v14, 0.0  ;;  %v168_v49 = vld [vmem:[%s715_s15 + $0x20] sm:$0xff]  ;;  %v167_v53 = vld [vmem:[%s715_s15 + $0x18] sm:$0xff]  ;;  %v169_v58 = vld [vmem:[%s715_s15 + $0x28] sm:$0xff] }
  0x1a   : > { %630 = vperm.xlu1 %628, %v629_v11   ;;  %v320_v19 = vsel %vm316_vm2, %v573_v16, 0.0  ;;  %vm186_vm9 = vcmp.eq.f32.partialorder %v178_v12, 1.0  ;;  %vm187_vm10 = vcmp.eq.f32.partialorder %v179_v13, 1.0  ;;  %v574_v21 = vsel %vm183_vm8, 1.0, %v681_v8  ;;  %v170_v0 = vld [vmem:[%s715_s15 + $0x30] sm:$0xff]  ;;  %v171_v6 = vld [vmem:[%s715_s15 + $0x38] sm:$0xff] }
  0x1b   : > { %619 = vperm.xlu0 %617, %v618_v18   ;;  %v319_v22 = vadd.f32 %v318_v17, %v317_v20  ;;  %v577_v23 = vsel %vm186_vm9, 1.0, %v681_v8  ;;  %v578_v24 = vsel %vm187_vm10, 1.0, %v681_v8  ;;  %v322_v25 = vsel %vm316_vm2, %v574_v21, 0.0  ;;  %v315_v37 = vld [vmem:[#allocation5] sm:$0xff]  ;;  %p579_p5 = scmp.ne.s32.totalorder %s707_s10, 3 }
  0x1c   : > { %v634_v27 = vpack.i.bf16 %v578_v24, %v577_v23  ;;  %v324_v28 = vsel %vm316_vm2, %v575_v9, 0.0  ;;  %v623_v30 = vpack.i.bf16 %v574_v21, %v573_v16  ;;  %v326_v31 = vsel %vm316_vm2, %v576_v10, 0.0 }
  0x1d   : > { %v321_v26 = vadd.f32 %v320_v19, %v319_v22  ;;  %v328_v33 = vsel %vm316_vm2, %v577_v23, 0.0  ;;  %v330_v35 = vsel %vm316_vm2, %v578_v24, 0.0  ;;  %v224_v42 = vmul.f32 %v164_v40, %v164_v40  ;;  %v204_v19 = vld [vmem:[#allocation2] sm:$0xff]  ;;  %v223_v22 = vld [vmem:[#allocation3] sm:$0xff] }
  0x1e   : > { %v225_v43 = vmul.f32 %v165_v41, %v165_v41  ;;  %vm205_vm11 = vcmask 130048   ;;  %v228_v50 = vmul.f32 %v168_v49, %v168_v49  ;;  %v226_v56 = vmul.f32 %v166_v52, %v166_v52 }
  0x1f   : > { %v323_v29 = vadd.f32 %v322_v25, %v321_v26  ;;  %v206_v44 = vsel %vm205_vm11, %v164_v40, 0.0  ;;  %v207_v45 = vsel %vm205_vm11, %v165_v41, 0.0  ;;  %v232_v46 = vsel %vm205_vm11, %v224_v42, 0.0 }
  0x20   : > { %v233_v47 = vsel %vm205_vm11, %v225_v43, 0.0  ;;  %v208_v48 = vadd.f32 %v207_v45, %v206_v44  ;;  %v209_v54 = vsel %vm205_vm11, %v166_v52, 0.0  ;;  %v211_v55 = vsel %vm205_vm11, %v167_v53, 0.0 }
  0x21   : > { %v325_v32 = vadd.f32 %v324_v28, %v323_v29  ;;  %v234_v51 = vadd.f32 %v233_v47, %v232_v46  ;;  %v227_v57 = vmul.f32 %v167_v53, %v167_v53  ;;  %v213_v60 = vsel %vm205_vm11, %v168_v49, 0.0 }
  0x22   : > { %635 = vperm.xlu1 %628, %v634_v27   ;;  %v210_v59 = vadd.f32 %v209_v54, %v208_v48  ;;  %v229_v61 = vmul.f32 %v169_v58, %v169_v58  ;;  %v235_v62 = vsel %vm205_vm11, %v226_v56, 0.0  ;;  %v215_v3 = vsel %vm205_vm11, %v169_v58, 0.0 }
  0x23   : > { %v327_v34 = vadd.f32 %v326_v31, %v325_v32  ;;  %624 = vperm.xlu0 %617, %v623_v30   ;;  %v237_v63 = vsel %vm205_vm11, %v227_v57, 0.0  ;;  %v236_v2 = vadd.f32 %v235_v62, %v234_v51  ;;  %v239_v4 = vsel %vm205_vm11, %v228_v50, 0.0 }
  0x24   : > { %v212_v1 = vadd.f32 %v211_v55, %v210_v59  ;;  %v230_v5 = vmul.f32 %v170_v0, %v170_v0  ;;  %v241_v9 = vsel %vm205_vm11, %v229_v61, 0.0  ;;  %v217_v10 = vsel %vm205_vm11, %v170_v0, 0.0  ;;  %v249_v61 = vld [vmem:[#allocation4] sm:$0xff] }
  0x25   : > { %v329_v36 = vadd.f32 %v328_v33, %v327_v34  ;;  %v238_v8 = vadd.f32 %v237_v63, %v236_v2  ;;  %v231_v11 = vmul.f32 %v171_v6, %v171_v6  ;;  %v219_v14 = vsel %vm205_vm11, %v171_v6, 0.0 }
  0x26   : > { %v214_v7 = vadd.f32 %v213_v60, %v212_v1  ;;  %v243_v15 = vsel %vm205_vm11, %v230_v5, 0.0 }
  0x27   : > { %v331_v38 = vadd.f32 %v330_v35, %v329_v36  ;;  %v240_v13 = vadd.f32 %v239_v4, %v238_v8  ;;  %v245_v18 = vsel %vm205_vm11, %v231_v11, 0.0 }
  0x28   : > { %v216_v12 = vadd.f32 %v215_v3, %v214_v7 }
  0x29   : > { %v332_v39 = vadd.f32 %v331_v38, %v315_v37  ;;  %v242_v17 = vadd.f32 %v241_v9, %v240_v13 }
  0x2a   : > { %v218_v16 = vadd.f32 %v217_v10, %v216_v12 }
  0x2b   : > { %333 = vst.msk [vmem:[#allocation5] sm:$0xff] %vm316_vm2, %v332_v39  ;;  %v244_v21 = vadd.f32 %v243_v15, %v242_v17 }
  0x2c   : > { %v220_v20 = vadd.f32 %v219_v14, %v218_v16 }
  0x2d   : > { %v246_v24 = vadd.f32 %v245_v18, %v244_v21 }
  0x2e   : > { %v221_v23 = vadd.f32 %v220_v20, %v204_v19 }
  0x2f   : > { %v247_v25 = vadd.f32 %v246_v24, %v223_v22 }
  0x30   : > { %222 = vst.msk [vmem:[#allocation2] sm:$0xff] %vm205_vm11, %v221_v23 }
  0x31   : > { %248 = vst.msk [vmem:[#allocation3] sm:$0xff] %vm205_vm11, %v247_v25 }
  0x8c   : > { %v631_v26 = vpop.permute.xlu1 %630 }
  0x8d   : > { %v620_v27 = vpop.permute.xlu0 %619  ;;  %v632_v32 = vunpack.i.l.bf16 %v631_v26  ;;  %v633_v39 = vunpack.i.h.bf16 %v631_v26 }
  0x8e   : > { %v622_v28 = vunpack.i.h.bf16 %v620_v27  ;;  %v621_v29 = vunpack.i.l.bf16 %v620_v27 }
  0x8f   : > { %v294_v45 = vmul.f32 %v632_v32, %v168_v49 }
  0x90   : > { %v290_v30 = vmul.f32 %v621_v29, %v164_v40  ;;  %v291_v31 = vmul.f32 %v622_v28, %v165_v41  ;;  %v295_v40 = vmul.f32 %v633_v39, %v169_v58 }
  0x91   : > { %v305_v54 = vsel %vm205_vm11, %v294_v45, 0.0 }
  0x92   : > { %v298_v34 = vsel %vm205_vm11, %v290_v30, 0.0  ;;  %v299_v35 = vsel %vm205_vm11, %v291_v31, 0.0  ;;  %v307_v57 = vsel %vm205_vm11, %v295_v40, 0.0 }
  0x93   : > { %v300_v44 = vadd.f32 %v299_v35, %v298_v34 }
  0x94   : > { %v636_v38 = vpop.permute.xlu1 %635 }
  0x95   : > { %v625_v33 = vpop.permute.xlu0 %624  ;;  %v637_v46 = vunpack.i.l.bf16 %v636_v38  ;;  %v638_v41 = vunpack.i.h.bf16 %v636_v38 }
  0x96   : > { %v627_v36 = vunpack.i.h.bf16 %v625_v33  ;;  %v626_v37 = vunpack.i.l.bf16 %v625_v33 }
  0x97   : > { %v296_v55 = vmul.f32 %v637_v46, %v170_v0  ;;  %v297_v59 = vmul.f32 %v638_v41, %v171_v6 }
  0x98   : > { %v292_v42 = vmul.f32 %v626_v37, %v166_v52  ;;  %v293_v43 = vmul.f32 %v627_v36, %v167_v53 }
  0x99   : > { %v309_v53 = vsel %vm205_vm11, %v296_v55, 0.0  ;;  %v311_v60 = vsel %vm205_vm11, %v297_v59, 0.0 }
  0x9a   : > { %v301_v47 = vsel %vm205_vm11, %v292_v42, 0.0  ;;  %v303_v50 = vsel %vm205_vm11, %v293_v43, 0.0 }
  0x9b   : > { %v302_v48 = vadd.f32 %v301_v47, %v300_v44 }
  0x9d   : > { %v304_v51 = vadd.f32 %v303_v50, %v302_v48 }
  0x9f   : > { %v306_v56 = vadd.f32 %v305_v54, %v304_v51 }
  0xa1   : > { %v308_v52 = vadd.f32 %v307_v57, %v306_v56 }
  0xa3   : > { %v310_v49 = vadd.f32 %v309_v53, %v308_v52 }
  0xa5   : > { %v312_v62 = vadd.f32 %v311_v60, %v310_v49  ;;  %337 = sbr.rel (%p579_p5) target bundleno = 620 (0x26c), region = 36 }
  0xa7   : > { %v313_v58 = vadd.f32 %v312_v62, %v249_v61 }
  0xa9   : > { %314 = vst.msk [vmem:[#allocation4] sm:$0xff] %vm205_vm11, %v313_v58 }
  0xaa   : > { %v362_v63 = vld [vmem:[#allocation5] sm:$0xff]  ;;  %v682_v1 = vmov 40000.0   ;;  %v338_v15 = vld [vmem:[#allocation2] sm:$0xff]  ;;  %v683_v18 = vmov 200.0   ;;  %v346_v20 = vld [vmem:[#allocation3] sm:$0xff]  ;;  %v684_v27 = vmov 199.0  }
  0xab   : > { %v363_v0 = vsel %vm316_vm2, %v362_v63, 0.0  ;;  %639 = vrcp.f32 %v682_v1  ;;  %v339_v16 = vsel %vm205_vm11, %v338_v15, 0.0  ;;  %v347_v22 = vsel %vm205_vm11, %v346_v20, 0.0 }
  0xac   : > { %364 = vadd.xlane.f32.xlu0 %v363_v0  ;;  %v340_v17 = vrot.slane %v339_v16, 4  ;;  %641 = vrcp.f32 %v683_v18  ;;  %v348_v26 = vrot.slane %v347_v22, 4 }
  0xae   : > { %v341_v21 = vadd.f32 %v340_v17, %v339_v16  ;;  %v349_v32 = vadd.f32 %v348_v26, %v347_v22 }
  0xb0   : > { %v342_v25 = vrot.slane %v341_v21, 2  ;;  %v350_v38 = vrot.slane %v349_v32, 2  ;;  %v354_v52 = vld [vmem:[#allocation4] sm:$0xff] }
  0xb1   : > { %v640_v2 = vpop.eup %639  ;;  %v355_v61 = vsel %vm205_vm11, %v354_v52, 0.0 }
  0xb2   : > { %v427_v3 = vmul.f32 40000.0, %v640_v2  ;;  %vm431_vm12 = vweird.f32 %v640_v2  ;;  %v642_v23 = vpop.eup %641  ;;  %v343_v31 = vadd.f32 %v342_v25, %v341_v21  ;;  %v351_v47 = vadd.f32 %v350_v38, %v349_v32 }
  0xb3   : > { %v409_v29 = vmul.f32 200.0, %v642_v23  ;;  %vm413_vm15 = vweird.f32 %v642_v23  ;;  %v356_v63 = vrot.slane %v355_v61, 4 }
  0xb4   : > { %v428_v4 = vsub.f32 1.0, %v427_v3  ;;  %v344_v37 = vrot.slane %v343_v31, 1  ;;  %v352_v51 = vrot.slane %v351_v47, 1 }
  0xb5   : > { %v410_v34 = vsub.f32 1.0, %v409_v29 }
  0xb6   : > { %v429_v8 = vmul.f32 %v640_v2, %v428_v4  ;;  %v785_v46 = vadd.f32 %v344_v37, %v343_v31  ;;  %v353_v57 = vadd.f32 %v352_v51, %v351_v47 }
  0xb7   : > { %v411_v42 = vmul.f32 %v642_v23, %v410_v34 }
  0xb8   : > { %v430_v11 = vadd.f32 %v640_v2, %v429_v8  ;;  %v407_v54 = vmul.f32 %v785_v46, %v785_v46 }
  0xb9   : > { %v412_v40 = vadd.f32 %v642_v23, %v411_v42 }
  0xba   : > { %v432_v14 = vsel %vm431_vm12, %v640_v2, %v430_v11  ;;  %v357_v2 = vadd.f32 %v356_v63, %v355_v61  ;;  %vm464_vm12 = vcmask 122880  }
  0xbb   : > { %v789_v55 = vsel %vm413_vm15, %v642_v23, %v412_v40 }
  0xbc   : > { %v415_v59 = vmul.f32 %v789_v55, %v407_v54 }
  0xbe   : > { %v416_v62 = vsub.f32 %v353_v57, %v415_v59 }
 0x11f   : > { %v365_v5 = vpop.xlane.xlu0 %364 }
 0x120   : > { %v366_v6 = vrot.slane %v365_v5, 4 }
 0x122   : > { %v367_v7 = vadd.f32 %v366_v6, %v365_v5  ;;  %v358_v5 = vrot.slane %v357_v2, 2 }
 0x124   : > { %v368_v9 = vrot.slane %v367_v7, 2 }
 0x126   : > { %v369_v10 = vadd.f32 %v368_v9, %v367_v7  ;;  %v359_v9 = vadd.f32 %v358_v5, %v357_v2 }
 0x128   : > { %v370_v12 = vrot.slane %v369_v10, 1 }
 0x12a   : > { %v371_v13 = vadd.f32 %v370_v12, %v369_v10 }
 0x12c   : > { %584 = vpush %v371_v13  ;;  %v360_v13 = vrot.slane %v359_v9, 1 }
 0x12d   : > { %586 = vpush %v432_v14 }
 0x12e   : > { %v361_v18 = vadd.f32 %v360_v13, %v359_v9 }
 0x130   : > { %v374_v26 = vsub.f32 %v785_v46, %v361_v18 }
 0x15d   : > { %s777_s19 = spop %584 }
 0x15e   : > { %s373_s20 = ssub.f32 200.0, %s777_s19  ;;  %s587_s21 = spop %586  ;;  %v375_v60 = vstv %s777_s19 }
 0x15f   : > { %v387_v21 = vand.u32 2147483648, %v375_v60  ;;  %vm381_vm5 = vweird.f32 %v375_v60  ;;  %v385_v23 = vand.u32 2147483647, %v375_v60 }
 0x160   : > { %s425_s22 = smul.f32 %s777_s19, %s373_s20  ;;  %v391_v49 = vstv %s373_s20 }
 0x161   : > { %v403_v17 = vand.u32 2147483648, %v391_v49  ;;  %vm397_vm3 = vweird.f32 %v391_v49  ;;  %v401_v20 = vand.u32 2147483647, %v391_v49  ;;  %vm386_vm8 = vcmp.eq.f32.partialorder %v385_v23, 8.507059e+37 }
 0x162   : > { %s434_s23 = smul.f32 %s587_s21, %s425_s22 }
 0x163   : > { %v404_v25 = vor.u32 1.1754944e-38, %v403_v17  ;;  %vm402_vm7 = vcmp.eq.f32.partialorder %v401_v20, 8.507059e+37 }
 0x164   : > { %v435_v19 = vstv %s434_s23 }
 0x165   : > { %643 = vrsqrt.f32 %v435_v19  ;;  %vm443_vm13 = vcmp.eq.f32.partialorder %v435_v19, inf  ;;  %v446_v45 = vand.u32 2147483648, %v435_v19  ;;  %vm445_vm14 = vcmp.eq.f32.partialorder %v435_v19, 0.0 }
 0x166   : > { %645 = vrcp.f32 %v684_v27 }
 0x167   : > { %647 = vrcp.f32 %v391_v49 }
 0x168   : > { %649 = vrcp.f32 %v375_v60 }
 0x16b   : > { %v644_v24 = vpop.eup %643 }
 0x16c   : > { %v437_v28 = vmul.f32 %v644_v24, %v435_v19  ;;  %v646_v35 = vpop.eup %645 }
 0x16d   : > { %v418_v43 = vmul.f32 199.0, %v646_v35  ;;  %vm422_vm0 = vweird.f32 %v646_v35  ;;  %v648_v1 = vpop.eup %647 }
 0x16e   : > { %v438_v30 = vmul.f32 %v644_v24, %v437_v28  ;;  %v650_v3 = vpop.eup %649  ;;  %v393_v4 = vmul.f32 %v648_v1, %v391_v49  ;;  %vm398_vm1 = vweird.f32 %v648_v1  ;;  %v388_v28 = vor.u32 1.1754944e-38, %v387_v21 }
 0x16f   : > { %v419_v41 = vsub.f32 1.0, %v418_v43  ;;  %v377_v6 = vmul.f32 %v650_v3, %v375_v60  ;;  %vm382_vm2 = vweird.f32 %v650_v3  ;;  %vm399_vm4 = vmor %vm397_vm3, %vm398_vm1 }
 0x170   : > { %v439_v33 = vmul.f32 0.5, %v438_v30  ;;  %v394_v8 = vsub.f32 1.0, %v393_v4  ;;  %vm383_vm6 = vmor %vm381_vm5, %vm382_vm2 }
 0x171   : > { %v420_v56 = vmul.f32 %v646_v35, %v419_v41  ;;  %v378_v10 = vsub.f32 1.0, %v377_v6 }
 0x172   : > { %v440_v36 = vsub.f32 1.5, %v439_v33  ;;  %v395_v12 = vmul.f32 %v648_v1, %v394_v8 }
 0x173   : > { %v421_v53 = vadd.f32 %v646_v35, %v420_v56  ;;  %v379_v14 = vmul.f32 %v650_v3, %v378_v10 }
 0x174   : > { %v441_v39 = vmul.f32 %v644_v24, %v440_v36  ;;  %v396_v16 = vadd.f32 %v648_v1, %v395_v12 }
 0x175   : > { %v423_v58 = vsel %vm422_vm0, %v646_v35, %v421_v53  ;;  %v475_v35 = vlaneseq }
 0x176   : > { %v442_v44 = vmul.f32 %v441_v39, %v435_v19  ;;  %v424_v0 = vmul.f32 %v423_v58, %v416_v62  ;;  %v400_v24 = vsel %vm399_vm4, %v648_v1, %v396_v16 }
 0x177   : > { %v405_v29 = vsel %vm402_vm7, %v404_v25, %v400_v24  ;;  %v476_v38 = vand.u32 127, %v475_v35 }
 0x178   : > { %v444_v48 = vsel %vm443_vm13, %v435_v19, %v442_v44  ;;  %651 = vrsqrt.f32 %v424_v0  ;;  %v380_v19 = vadd.f32 %v650_v3, %v379_v14  ;;  %vm456_vm9 = vweird.f32 %v424_v0 }
 0x179   : > { %v447_v50 = vsel %vm445_vm14, %v446_v45, %v444_v48  ;;  %v406_v32 = vmul.f32 %v405_v29, %v374_v26  ;;  %vm477_vm13 = vcmp.eq.s32.totalorder %v476_v38, 0 }
 0x17a   : > { %588 = vpush %v447_v50  ;;  %v384_v27 = vsel %vm383_vm6, %v650_v3, %v380_v19 }
 0x17b   : > { %v389_v31 = vsel %vm386_vm8, %v388_v28, %v384_v27 }
 0x17c   : > { %v390_v34 = vmul.f32 %v389_v31, %v361_v18 }
 0x17e   : > { %v652_v7 = vpop.eup %651  ;;  %v449_v36 = vsub.f32 %v390_v34, %v406_v32 }
 0x17f   : > { %v451_v11 = vmul.f32 %v652_v7, %v424_v0  ;;  %vm457_vm10 = vweird.f32 %v652_v7 }
 0x180   : > { %vm458_vm11 = vmor %vm456_vm9, %vm457_vm10 }
 0x181   : > { %v452_v15 = vmul.f32 %v652_v7, %v451_v11 }
 0x183   : > { %v453_v22 = vmul.f32 0.5, %v452_v15 }
 0x185   : > { %v454_v30 = vsub.f32 1.5, %v453_v22 }
 0x187   : > { %v455_v33 = vmul.f32 %v652_v7, %v454_v30 }
 0x189   : > { %v459_v37 = vsel %vm458_vm11, %v652_v7, %v455_v33 }
 0x18a   : > { %v460_v39 = vmul.f32 %v459_v37, %v449_v36 }
 0x1ab   : > { %s589_s24 = spop %588 }
 0x1ac   : > { %v461_v42 = vstv %s589_s24 }
 0x1ad   : > { %v462_v43 = vmul.f32 %v461_v42, %v460_v39 }
 0x1af   : > { %v463_v44 = vand.u32 2147483647, %v462_v43 }
 0x1b1   : > { %v465_v45 = vsel %vm464_vm12, %v463_v44, 0.0  ;;  %v478_v46 = vsel %vm477_vm13, %v463_v44, 0.0 }
 0x1b2   : > { %466 = vadd.xlane.f32.xlu0 %v465_v45  ;;  %v479_v47 = vsel %vm464_vm12, %v478_v46, 0.0 }
 0x1b3   : > { %480 = vadd.xlane.f32.xlu1 %v479_v47 }
 0x225   : > { %v467_v48 = vpop.xlane.xlu0 %466 }
 0x226   : > { %v468_v40 = vrot.slane %v467_v48, 4  ;;  %v481_v41 = vpop.xlane.xlu1 %480 }
 0x227   : > { %v482_v50 = vrot.slane %v481_v41, 4 }
 0x228   : > { %v469_v51 = vadd.f32 %v468_v40, %v467_v48 }
 0x229   : > { %v483_v54 = vadd.f32 %v482_v50, %v481_v41 }
 0x22a   : > { %v470_v56 = vrot.slane %v469_v51, 2 }
 0x22b   : > { %v484_v57 = vrot.slane %v483_v54, 2 }
 0x22c   : > { %v471_v59 = vadd.f32 %v470_v56, %v469_v51 }
 0x22d   : > { %v485_v52 = vadd.f32 %v484_v57, %v483_v54 }
 0x22e   : > { %v472_v53 = vrot.slane %v471_v59, 1 }
 0x22f   : > { %v486_v49 = vrot.slane %v485_v52, 1 }
 0x230   : > { %v473_v60 = vadd.f32 %v472_v53, %v471_v59 }
 0x231   : > { %v487_v61 = vadd.f32 %v486_v49, %v485_v52 }
 0x232   : > { %590 = vpush %v473_v60 }
 0x233   : > { %592 = vpush %v487_v61 }
 0x234   : > { %594 = vpush %v789_v55 }
 0x263   : > { %s591_s25 = spop %590 }
 0x264   : > { %s593_s26 = spop %592 }
 0x265   : > { %s489_s27 = ssub.f32 %s591_s25, %s593_s26  ;;  %s595_s28 = spop %594 }
 0x266   : > { %s490_s29 = ssub.f32 1.0, %s593_s26 }
 0x267   : > { %s499_s30 = smul.f32 %s595_s28, %s489_s27 }
 0x269   : > { %s500_s3 = sadd.f32 %s499_s30, %s490_s29 }
 0x26b   : > { %502 = sst [smem:[#allocation6]] %s500_s3 }
 0x26c PF: > { %p600_p6 = scmp.eq.s32.totalorder %s707_s10, 3  ;;  %s509_s6 = sshll.u32 %s807_s2, 4  ;;  %s510_s6 = int_to_ptr.hbm [resolvable:$true] %s509_s6 }
 0x26d   : > { %s685_s7 = smov [#allocation6]  }
 0x26e   : > { %597 = dma.smem_to_hbm (%p600_p6), %s685_s7, 16, %s510_s6, [#allocation7]  }
 0x26f   : > { %672 = dma.done.wait (%p600_p6), [#allocation7], 16  }
 0x270   : > { %674 = vsyncadd (%p600_p6), [#allocation7], 4294967280 }
 0x271   : > { %518 = sfence }
 0x272 PF: > { %s13_s9 = sadd.s32 1, %s677_s9  }
 0x273   : > { %p10_p7 = scmp.ge.s32.totalorder %s13_s9, 6  }
 0x275   :  { %12 = sbr.rel (!%p10_p7) target bundleno = 1 (0x1), region = 67 }
 0x27a   :  { %524 = vsyncpa [#allocation7], 1 }
 0x27b   :  { %526 = vsyncpa [#allocation7 + $0x1], 1 }

</bundles_post_ra>
